<compile_context>
chip_gen: v5e
topology: v5e:2x2
jax: 0.10.0
libtpu: 0.0.40
codegen_flags: <defaults>
</compile_context>

<pallas_src>
import functools
import math

import jax
import jax.numpy as jnp
import numpy as np
from jax.experimental import pallas as pl
from jax.experimental.pallas import tpu as pltpu

LOG_2PI = math.log(2.0 * math.pi)


def _round_up(x, m):
    return ((x + m - 1) // m) * m


def _choose_tile(batch):
    """Batch tile: as big as possible (overhead-bound kernel), but keep >=2
    grid steps when the batch is large enough so v7x's 2 TensorCores both work."""
    cap = 2048
    full = _round_up(batch, 8)
    if full <= cap:
        if batch >= 1024:
            # Split into two tiles: costs ~0.35us extra on 1-TC chips, gains
            # up to 2x on v7x megacore.
            return _round_up(pl.cdiv(batch, 2), 8)
        return full
    return cap  # grid already has >= 2 steps


# ----------------------------------------------------------------------------
# Kernel
# ----------------------------------------------------------------------------
def actor_critic_kernel(
    x_ref,                           # (TB, S+A)  fused [state | action]
    w1, b1, w2, b2, w3, b3,          # fused bf16 weights / f32 biases
    out_ref,                         # (TB, 2)  -> [:, 0] = logp, [:, 1] = value
    *, state_dim, action_dim, inv_var, logp_const,
):
    x = x_ref[...]                                       # f32 (TB, S+A)
    a = x[:, state_dim:state_dim + action_dim]           # f32 (TB, A)

    # Fused actor|critic MLP: 3 lane-dense bf16 matmuls, f32 accumulate,
    # f32 bias add + tanh (v5e has no bf16 VPU/EUP).
    h = jnp.tanh(
        jnp.dot(x.astype(jnp.bfloat16), w1[...],
                preferred_element_type=jnp.float32) + b1[...])        # (TB, 128)
    h = jnp.tanh(
        jnp.dot(h.astype(jnp.bfloat16), w2[...],
                preferred_element_type=jnp.float32) + b2[...])        # (TB, 64)
    z = (jnp.dot(h.astype(jnp.bfloat16), w3[...],
                 preferred_element_type=jnp.float32) + b3[...])       # (TB, A+1)

    mean = jnp.tanh(z[:, :action_dim])                   # actor head gets tanh
    v = z[:, action_dim:action_dim + 1]                  # critic head is linear

    # Diagonal MultivariateNormal log_prob with uniform variance:
    #   logp = -0.5 * (sum(diff^2)/var + sum_log_var + d*log(2*pi))
    diff = a - mean
    quad = jnp.sum(diff * diff, axis=-1, keepdims=True)  # (TB, 1)
    logp = logp_const - (0.5 * inv_var) * quad           # (TB, 1)

    # Direct sub-stores (no lane-concat shuffle before the masked store).
    out_ref[:, 0:1] = logp
    out_ref[:, 1:2] = v


# ----------------------------------------------------------------------------
# Parameter construction (PyTorch-default Linear init) + actor/critic fusion
# ----------------------------------------------------------------------------
def init_linear(key, fan_in, fan_out):
    kw, kb = jax.random.split(key)
    bound = 1.0 / math.sqrt(fan_in)
    w = jax.random.uniform(kw, (fan_in, fan_out), jnp.float32, -bound, bound)
    b = jax.random.uniform(kb, (1, fan_out), jnp.float32, -bound, bound)
    return w, b


def make_params(key, state_dim, action_dim):
    ks = jax.random.split(key, 6)
    aw1, ab1 = init_linear(ks[0], state_dim, 64)
    aw2, ab2 = init_linear(ks[1], 64, 32)
    aw3, ab3 = init_linear(ks[2], 32, action_dim)
    cw1, cb1 = init_linear(ks[3], state_dim, 64)
    cw2, cb2 = init_linear(ks[4], 64, 32)
    cw3, cb3 = init_linear(ks[5], 32, 1)
    return (aw1, ab1, aw2, ab2, aw3, ab3, cw1, cb1, cw2, cb2, cw3, cb3)


def fuse_params(params, state_dim, action_dim):
    (aw1, ab1, aw2, ab2, aw3, ab3, cw1, cb1, cw2, cb2, cw3, cb3) = params
    # Layer 1: concat along outputs -> 128 lanes; zero-extend over action rows
    # so the fused (B, S+A) input can be fed straight into the matmul.
    w1 = jnp.concatenate([aw1, cw1], axis=-1)                       # (S, 128)
    w1 = jnp.concatenate(
        [w1, jnp.zeros((action_dim, w1.shape[1]), jnp.float32)], axis=0)  # (S+A, 128)
    b1 = jnp.concatenate([ab1, cb1], axis=-1)                       # (1, 128)
    # Layer 2: block-diagonal (128, 64).
    w2 = jnp.zeros((128, 64), jnp.float32)
    w2 = w2.at[:64, :32].set(aw2).at[64:, 32:].set(cw2)
    b2 = jnp.concatenate([ab2, cb2], axis=-1)                       # (1, 64)
    # Layer 3: block-diagonal (64, action_dim + 1).
    w3 = jnp.zeros((64, action_dim + 1), jnp.float32)
    w3 = w3.at[:32, :action_dim].set(aw3).at[32:, action_dim:].set(cw3)
    b3 = jnp.concatenate([ab3, cb3], axis=-1)                       # (1, A+1)
    # bf16 matmul operands (MXU-native on all gens); biases stay f32.
    return (w1.astype(jnp.bfloat16), b1,
            w2.astype(jnp.bfloat16), b2,
            w3.astype(jnp.bfloat16), b3)


# ----------------------------------------------------------------------------
# Wrapper == ActorCritic.evaluate(state, action)
# ----------------------------------------------------------------------------
def actor_critic_evaluate(state, action, fused_params, action_std):
    w1, b1, w2, b2, w3, b3 = fused_params
    B, state_dim = state.shape
    action_dim = action.shape[1]
    SA = state_dim + action_dim
    H1, H2, A1 = w1.shape[1], w2.shape[1], w3.shape[1]

    # Constant distribution terms (action_std is a Python constant).
    var = float(action_std) * float(action_std)
    inv_var = 1.0 / var
    sum_log_var = action_dim * math.log(var)
    logp_const = -0.5 * (sum_log_var + action_dim * LOG_2PI)
    ent_const = 0.5 * action_dim * (1.0 + LOG_2PI) + 0.5 * sum_log_var

    # Single lane-dense input (one DMA per tile instead of two).
    x = jnp.concatenate([state, action], axis=-1)                   # (B, S+A)

    TB = _choose_tile(B)
    grid = (pl.cdiv(B, TB),)   # no padding: ragged last block is masked

    cost = pl.CostEstimate(
        flops=2 * B * (SA * H1 + H1 * H2 + H2 * A1),
        transcendentals=B * (H1 + H2 + action_dim),
        bytes_accessed=4 * B * (SA + 2)
        + 2 * (SA * H1 + H1 * H2 + H2 * A1)
        + 4 * (H1 + H2 + A1),
    )

    kernel = functools.partial(
        actor_critic_kernel,
        state_dim=state_dim, action_dim=action_dim,
        inv_var=inv_var, logp_const=logp_const,
    )

    out = pl.pallas_call(
        kernel,
        out_shape=jax.ShapeDtypeStruct((B, 2), jnp.float32),
        grid=grid,
        in_specs=[
            pl.BlockSpec((TB, SA), lambda i: (i, 0)),
            # Weights/biases: constant index_map -> DMA'd once, VMEM-resident.
            pl.BlockSpec((SA, H1), lambda i: (0, 0)),
            pl.BlockSpec((1, H1), lambda i: (0, 0)),
            pl.BlockSpec((H1, H2), lambda i: (0, 0)),
            pl.BlockSpec((1, H2), lambda i: (0, 0)),
            pl.BlockSpec((H2, A1), lambda i: (0, 0)),
            pl.BlockSpec((1, A1), lambda i: (0, 0)),
        ],
        out_specs=pl.BlockSpec((TB, 2), lambda i: (i, 0)),
        compiler_params=pltpu.CompilerParams(
            dimension_semantics=("parallel",),  # shards batch across v7x's 2 TCs
        ),
        cost_estimate=cost,
    )(x, w1, b1, w2, b2, w3, b3)

    logp = out[:, 0]
    value = out[:, 1]
    ent = jnp.full((B,), ent_const, jnp.float32)  # entropy is state-independent
    return logp, value, ent


# ----------------------------------------------------------------------------
# Pure-JAX f32 reference (uses the original un-fused parameters)
# ----------------------------------------------------------------------------
def reference_evaluate(state, action, params, action_std):
    (aw1, ab1, aw2, ab2, aw3, ab3, cw1, cb1, cw2, cb2, cw3, cb3) = params
    var = action_std * action_std
    action_dim = action.shape[1]
    h = jnp.tanh(state @ aw1 + ab1)
    h = jnp.tanh(h @ aw2 + ab2)
    mean = jnp.tanh(h @ aw3 + ab3)
    g = jnp.tanh(state @ cw1 + cb1)
    g = jnp.tanh(g @ cw2 + cb2)
    v = g @ cw3 + cb3
    diff = action - mean
    quad = jnp.sum(diff * diff / var, axis=-1)
    slv = action_dim * math.log(var)
    logp = -0.5 * (quad + slv + action_dim * LOG_2PI)
    ent = jnp.full((state.shape[0],), 0.5 * action_dim * (1.0 + LOG_2PI) + 0.5 * slv)
    return logp, v[:, 0], ent


def _check(B, state_dim, action_dim, action_std, params, fused, key):
    ks, ka = jax.random.split(key)
    state = jax.random.normal(ks, (B, state_dim), jnp.float32)
    action = jax.random.normal(ka, (B, action_dim), jnp.float32)

    logp, value, ent = actor_critic_evaluate(state, action, fused, action_std)
    jax.block_until_ready((logp, value, ent))

    ref_logp, ref_value, ref_ent = reference_evaluate(state, action, params, action_std)
    # bf16 matmul operands -> relaxed tolerance vs. the f32 reference.
    assert np.allclose(np.asarray(logp), np.asarray(ref_logp), atol=5e-2), "logp mismatch"
    assert np.allclose(np.asarray(value), np.asarray(ref_value), atol=5e-2), "value mismatch"
    assert np.allclose(np.asarray(ent), np.asarray(ref_ent), atol=1e-5), "entropy mismatch"


if __name__ == "__main__":
    state_dim, action_dim, action_std = 16, 4, 0.5

    key = jax.random.PRNGKey(0)
    kp, k1, k2 = jax.random.split(key, 3)
    params = make_params(kp, state_dim, action_dim)
    fused = fuse_params(params, state_dim, action_dim)

    # TODO(synk): only evaluate() is implemented; act()'s RNG sampling path
    # (dist.sample) is host-side and not part of this kernel.
    _check(8, state_dim, action_dim, action_std, params, fused, k1)    # exact tile
    _check(13, state_dim, action_dim, action_std, params, fused, k2)   # ragged (masked) block

    print("KERNEL_OK")
</pallas_src>

<mosaic_0001>
module attributes {stable_mosaic.version = 11 : i64} {
  func.func @actor_critic_kernel(%arg0: i32, %arg1: memref<8x20xf32, #tpu.memory_space<vmem>>, %arg2: memref<20x128xbf16, #tpu.memory_space<vmem>>, %arg3: memref<1x128xf32, #tpu.memory_space<vmem>>, %arg4: memref<128x64xbf16, #tpu.memory_space<vmem>>, %arg5: memref<1x64xf32, #tpu.memory_space<vmem>>, %arg6: memref<64x5xbf16, #tpu.memory_space<vmem>>, %arg7: memref<1x5xf32, #tpu.memory_space<vmem>>, %arg8: memref<8x2xf32, #tpu.memory_space<vmem>>) attributes {dimension_semantics = [#tpu.dimension_semantics<parallel>], iteration_bounds = array<i64: 1>, scalar_prefetch = 0 : i64, scratch_operands = 0 : i64, tpu.core_type = #tpu.core_type<tc>, window_params = [{transform_indices = @transform_0, window_bounds = array<i64: 8, 20>}, {pipeline_mode = #tpu.pipeline_mode<synchronous>, transform_indices = @transform_1, window_bounds = array<i64: 20, 128>}, {pipeline_mode = #tpu.pipeline_mode<synchronous>, transform_indices = @transform_2, window_bounds = array<i64: 1, 128>}, {pipeline_mode = #tpu.pipeline_mode<synchronous>, transform_indices = @transform_3, window_bounds = array<i64: 128, 64>}, {pipeline_mode = #tpu.pipeline_mode<synchronous>, transform_indices = @transform_4, window_bounds = array<i64: 1, 64>}, {pipeline_mode = #tpu.pipeline_mode<synchronous>, transform_indices = @transform_5, window_bounds = array<i64: 64, 5>}, {pipeline_mode = #tpu.pipeline_mode<synchronous>, transform_indices = @transform_6, window_bounds = array<i64: 1, 5>}, {transform_indices = @transform_7, window_bounds = array<i64: 8, 2>}]} {
    %c0 = arith.constant 0 : index
    %c0_0 = arith.constant 0 : index
    %0 = vector.load %arg1[%c0, %c0_0] : memref<8x20xf32, #tpu.memory_space<vmem>>, vector<8x20xf32>
    %1 = vector.extract_strided_slice %0 {offsets = [0, 16], sizes = [8, 4], strides = [1, 1]} : vector<8x20xf32> to vector<8x4xf32>
    %2 = arith.truncf %0 : vector<8x20xf32> to vector<8x20xbf16>
    %c0_1 = arith.constant 0 : index
    %c0_2 = arith.constant 0 : index
    %3 = vector.load %arg2[%c0_1, %c0_2] : memref<20x128xbf16, #tpu.memory_space<vmem>>, vector<20x128xbf16>
    %cst = arith.constant dense<0.000000e+00> : vector<8x128xf32>
    %4 = tpu.matmul %2, %3, %cst {dimension_numbers = #tpu.dot_dimension_numbers<[1], [0], [0], [1], [0, 0, 1, 1], [], []>} : vector<8x20xbf16>, vector<20x128xbf16>, vector<8x128xf32> -> vector<8x128xf32>
    %c0_3 = arith.constant 0 : index
    %c0_4 = arith.constant 0 : index
    %5 = vector.load %arg3[%c0_3, %c0_4] : memref<1x128xf32, #tpu.memory_space<vmem>>, vector<1x128xf32>
    %6 = vector.broadcast %5 : vector<1x128xf32> to vector<8x128xf32>
    %7 = arith.addf %4, %6 : vector<8x128xf32>
    %8 = math.tanh %7 : vector<8x128xf32>
    %9 = arith.truncf %8 : vector<8x128xf32> to vector<8x128xbf16>
    %c0_5 = arith.constant 0 : index
    %c0_6 = arith.constant 0 : index
    %10 = vector.load %arg4[%c0_5, %c0_6] : memref<128x64xbf16, #tpu.memory_space<vmem>>, vector<128x64xbf16>
    %cst_7 = arith.constant dense<0.000000e+00> : vector<8x64xf32>
    %11 = tpu.matmul %9, %10, %cst_7 {dimension_numbers = #tpu.dot_dimension_numbers<[1], [0], [0], [1], [0, 0, 1, 1], [], []>} : vector<8x128xbf16>, vector<128x64xbf16>, vector<8x64xf32> -> vector<8x64xf32>
    %c0_8 = arith.constant 0 : index
    %c0_9 = arith.constant 0 : index
    %12 = vector.load %arg5[%c0_8, %c0_9] : memref<1x64xf32, #tpu.memory_space<vmem>>, vector<1x64xf32>
    %13 = vector.broadcast %12 : vector<1x64xf32> to vector<8x64xf32>
    %14 = arith.addf %11, %13 : vector<8x64xf32>
    %15 = math.tanh %14 : vector<8x64xf32>
    %16 = arith.truncf %15 : vector<8x64xf32> to vector<8x64xbf16>
    %c0_10 = arith.constant 0 : index
    %c0_11 = arith.constant 0 : index
    %17 = vector.load %arg6[%c0_10, %c0_11] : memref<64x5xbf16, #tpu.memory_space<vmem>>, vector<64x5xbf16>
    %cst_12 = arith.constant dense<0.000000e+00> : vector<8x5xf32>
    %18 = tpu.matmul %16, %17, %cst_12 {dimension_numbers = #tpu.dot_dimension_numbers<[1], [0], [0], [1], [0, 0, 1, 1], [], []>} : vector<8x64xbf16>, vector<64x5xbf16>, vector<8x5xf32> -> vector<8x5xf32>
    %c0_13 = arith.constant 0 : index
    %c0_14 = arith.constant 0 : index
    %19 = vector.load %arg7[%c0_13, %c0_14] : memref<1x5xf32, #tpu.memory_space<vmem>>, vector<1x5xf32>
    %20 = vector.broadcast %19 : vector<1x5xf32> to vector<8x5xf32>
    %21 = arith.addf %18, %20 : vector<8x5xf32>
    %22 = vector.extract_strided_slice %21 {offsets = [0, 0], sizes = [8, 4], strides = [1, 1]} : vector<8x5xf32> to vector<8x4xf32>
    %23 = math.tanh %22 : vector<8x4xf32>
    %24 = vector.extract_strided_slice %21 {offsets = [0, 4], sizes = [8, 1], strides = [1, 1]} : vector<8x5xf32> to vector<8x1xf32>
    %25 = arith.subf %1, %23 : vector<8x4xf32>
    %26 = arith.mulf %25, %25 : vector<8x4xf32>
    %cst_15 = arith.constant dense<0.000000e+00> : vector<8xf32>
    %27 = vector.multi_reduction <add>, %26, %cst_15 [1] : vector<8x4xf32> to vector<8xf32>
    %28 = vector.shape_cast %27 : vector<8xf32> to vector<8x1xf32>
    %cst_16 = arith.constant 2.000000e+00 : f32
    %29 = vector.broadcast %cst_16 : f32 to vector<8x1xf32>
    %30 = arith.mulf %29, %28 : vector<8x1xf32>
    %cst_17 = arith.constant -0.9031654 : f32
    %31 = vector.broadcast %cst_17 : f32 to vector<8x1xf32>
    %32 = arith.subf %31, %30 : vector<8x1xf32>
    %c0_18 = arith.constant 0 : index
    %c0_19 = arith.constant 0 : index
    %33 = vector.load %arg8[%c0_18, %c0_19] : memref<8x2xf32, #tpu.memory_space<vmem>>, vector<8x1xf32>
    tpu.vector_store %arg8[%c0_18, %c0_19], %32 {strides = array<i32>} : memref<8x2xf32, #tpu.memory_space<vmem>>, vector<8x1xf32>,
    %c0_20 = arith.constant 0 : index
    %c1 = arith.constant 1 : index
    %34 = vector.load %arg8[%c0_20, %c1] : memref<8x2xf32, #tpu.memory_space<vmem>>, vector<8x1xf32>
    tpu.vector_store %arg8[%c0_20, %c1], %24 {strides = array<i32>} : memref<8x2xf32, #tpu.memory_space<vmem>>, vector<8x1xf32>,
    return
  }
  func.func @transform_0(%arg0: i32) -> (i32, i32) {
    %c0_i32 = arith.constant 0 : i32
    %c0_i32_0 = arith.constant 0 : i32
    return %arg0, %c0_i32 : i32, i32
  }
  func.func @transform_1(%arg0: i32) -> (i32, i32) {
    %c0_i32 = arith.constant 0 : i32
    %c0_i32_0 = arith.constant 0 : i32
    %c0_i32_1 = arith.constant 0 : i32
    return %c0_i32, %c0_i32_0 : i32, i32
  }
  func.func @transform_2(%arg0: i32) -> (i32, i32) {
    %c0_i32 = arith.constant 0 : i32
    %c0_i32_0 = arith.constant 0 : i32
    %c0_i32_1 = arith.constant 0 : i32
    return %c0_i32, %c0_i32_0 : i32, i32
  }
  func.func @transform_3(%arg0: i32) -> (i32, i32) {
    %c0_i32 = arith.constant 0 : i32
    %c0_i32_0 = arith.constant 0 : i32
    %c0_i32_1 = arith.constant 0 : i32
    return %c0_i32, %c0_i32_0 : i32, i32
  }
  func.func @transform_4(%arg0: i32) -> (i32, i32) {
    %c0_i32 = arith.constant 0 : i32
    %c0_i32_0 = arith.constant 0 : i32
    %c0_i32_1 = arith.constant 0 : i32
    return %c0_i32, %c0_i32_0 : i32, i32
  }
  func.func @transform_5(%arg0: i32) -> (i32, i32) {
    %c0_i32 = arith.constant 0 : i32
    %c0_i32_0 = arith.constant 0 : i32
    %c0_i32_1 = arith.constant 0 : i32
    return %c0_i32, %c0_i32_0 : i32, i32
  }
  func.func @transform_6(%arg0: i32) -> (i32, i32) {
    %c0_i32 = arith.constant 0 : i32
    %c0_i32_0 = arith.constant 0 : i32
    %c0_i32_1 = arith.constant 0 : i32
    return %c0_i32, %c0_i32_0 : i32, i32
  }
  func.func @transform_7(%arg0: i32) -> (i32, i32) {
    %c0_i32 = arith.constant 0 : i32
    %c0_i32_0 = arith.constant 0 : i32
    return %arg0, %c0_i32 : i32, i32
  }
}

</mosaic_0001>

<bundles_post_ra>
// kernel: tpu_custom_call.1
= control target key start
LH: loop header
LB: loop body
LE: loop exit
PB: predicated region body
PF: predicated region fallthrough
CT: control target
= control target key end

     0   :  { %vm49_vm0 = vcmask 1041408   ;;  %vm45_vm1 = vcmask 162816   ;;  %vm187_vm2 = vcmask 523264   ;;  %vm215_vm3 = vcmask 31744   ;;  %s314_s10 = smov 125   ;;  %s415_s1 = inlined_call_operand.vmem [shape: bf16[20,128], index: 1, kind: input, shape index: {}]   ;;  %s416_s3 = inlined_call_operand.vmem [shape: bf16[128,64], index: 3, kind: input, shape index: {}]   ;;  %s417_s2 = inlined_call_operand.vmem [shape: f32[1,128], index: 2, kind: input, shape index: {}]   ;;  %s418_s0 = inlined_call_operand.vmem [shape: f32[8,20], index: 0, kind: input, shape index: {}]   ;;  %s419_s4 = inlined_call_operand.vmem [shape: f32[1,64], index: 4, kind: input, shape index: {}]   ;;  %s420_s5 = inlined_call_operand.vmem [shape: bf16[64,5], index: 5, kind: input, shape index: {}]   ;;  %s421_s6 = inlined_call_operand.vmem [shape: f32[1,5], index: 6, kind: input, shape index: {}]   ;;  %s422_s7 = inlined_call_operand.vmem [shape: f32[8,2], index: 7, kind: output, shape index: {}]  }
   0x1   :  { %v31_v0 = vld [vmem:[%s415_s1 + $0x8] sm:$0x3]  ;;  %v295_v2 = vld [vmem:[%s416_s3 + $0x38] sm:$0xff]  ;;  %v294_v4 = vld [vmem:[%s416_s3 + $0x30] sm:$0xff]  ;;  %vm221_vm4 = vcmask 7168   ;;  %vm227_vm5 = vcmask 15368  }
   0x2   :  { %v41_v1 = vunpack.c.l.b16 %v31_v0  ;;  %136 = vmatpush.bf16.msra.mxu1 %v295_v2  ;;  %v287_v6 = vld [vmem:[%s415_s1] sm:$0xff]  ;;  %v293_v8 = vld [vmem:[%s416_s3 + $0x28] sm:$0xff]  ;;  %v291_v11 = vld [vmem:[%s416_s3 + $0x18] sm:$0xff] }
   0x3   :  { %v27_v7 = vld [vmem:[%s418_s0] sm:$0xff]  ;;  %v290_v12 = vld [vmem:[%s416_s3 + $0x10] sm:$0xff]  ;;  %v289_v13 = vld [vmem:[%s416_s3 + $0x8] sm:$0xff] }
   0x4   :  { %v43_v3 = vpack.c.b16 %v41_v1, %v41_v1  ;;  %v28_v9 = vpack.c.bf16 %v27_v7, %v27_v7  ;;  %v292_v10 = vld [vmem:[%s416_s3 + $0x20] sm:$0xff]  ;;  %v299_v15 = vld [vmem:[%s420_s5 + $0x18] sm:$0xff]  ;;  %v298_v22 = vld [vmem:[%s420_s5 + $0x10] sm:$0xff] }
   0x5   :  { %v288_v14 = vld [vmem:[%s416_s3] sm:$0xff]  ;;  %195 = vmatpush.bf16.msra.mxu2 %v299_v15  ;;  %v297_v23 = vld [vmem:[%s420_s5 + $0x8] sm:$0xff] }
   0x6   :  { %v51_v5 = vsel %vm49_vm0, %v43_v3, 0  ;;  %137 = vmatpush.bf16.msra.mxu1 %v294_v4  ;;  %v303_v16 = vld [vmem:[%s417_s2] ss:$0 sm:$0xff] }
   0x7   :  { %59 = vmatpush.bf16.msra.mxu0 %v51_v5  ;;  %v296_v24 = vld [vmem:[%s420_s5] sm:$0xff]  ;;  %s312_s5 = smov 16  }
   0x8   :  { %v304_v25 = vld [vmem:[%s419_s4] ss:$0 sm:$0xff]  ;;  %s313_s4 = smov 112  }
   0x9   :  { %196 = vmatpush.bf16.msra.mxu2 %v298_v22  ;;  %v305_v31 = vld [vmem:[%s421_s6] ss:$0 sm:$0xff] }
   0xa   :  { %138 = vmatpush.bf16.msra.mxu1 %v293_v8 }
   0xb   :  { %60 = vmatpush.bf16.msra.mxu0 %v287_v6 }
   0xd   :  { %197 = vmatpush.bf16.msra.mxu2 %v297_v23 }
   0xe   :  { %237 = vmatmul.msk.bf16.vlgmr.msra.gmra.mxu0 %vm45_vm1, %v28_v9  ;;  %139 = vmatpush.bf16.msra.mxu1 %v292_v10 }
  0x11   :  { %198 = vmatpush.bf16.msra.mxu2 %v296_v24 }
  0x12   :  { %140 = vmatpush.bf16.msra.mxu1 %v291_v11 }
  0x16   :  { %141 = vmatpush.bf16.msra.mxu1 %v290_v12 }
  0x1a   :  { %142 = vmatpush.bf16.msra.mxu1 %v289_v13 }
  0x1e   :  { %143 = vmatpush.bf16.msra.mxu1 %v288_v14 }
  0x8b   :  { %v62_v17 = vpop.f32.mrf.mxu0 }
  0x8c   :  { %v63_v18 = vadd.f32 %v303_v16, %v62_v17 }
  0x8e   :  { %306 = vtanh.f32 %v63_v18 }
  0x93   :  { %v64_v19 = vpop.f32.mrf.mxu0 }
  0x94   :  { %v307_v20 = vpop.eup %306 }
  0x95   :  { %v67_v21 = vpack.c.bf16 %v307_v20, %v307_v20 }
  0x97   :  { %144 = vmatmul.bf16.vlgmr.msra.gmra.mxu1 %v67_v21 }
 0x114   :  { %v145_v26 = vpop.f32.mrf.mxu1 }
 0x115   :  { %v146_v27 = vadd.f32 %v304_v25, %v145_v26 }
 0x117   :  { %308 = vtanh.f32 %v146_v27 }
 0x11c   :  { %v147_v28 = vpop.f32.mrf.mxu1 }
 0x11d   :  { %v309_v29 = vpop.eup %308 }
 0x11e   :  { %v150_v30 = vpack.c.bf16 %v309_v29, %v309_v29 }
 0x120   :  { %286 = vmatmul.msk.bf16.vlgmr.msra.gmra.mxu2 %vm187_vm2, %v150_v30 }
 0x1a3   :  { %v200_v32 = vpop.f32.mrf.mxu2 }
 0x1a4   :  { %v201_v33 = vadd.f32 %v305_v31, %v200_v32 }
 0x1a6   :  { %310 = vtanh.f32 %v201_v33 }
 0x1ab   :  { %v202_v34 = vpop.f32.mrf.mxu2 }
 0x1ac   :  { %v311_v35 = vpop.eup %310 }
 0x1ad   :  { %206 = vrot.lane.b32.xlu0 %v311_v35, %s312_s5 }
 0x21f   :  { %v207_v36 = vpop.permute.xlu0 %206 }
 0x220   :  { %v209_v37 = vsub.f32 %v27_v7, %v207_v36 }
 0x222   :  { %v210_v38 = vmul.f32 %v209_v37, %v209_v37 }
 0x224   :  { %212 = vrot.lane.b32.xlu0 %v210_v38, %s313_s4 }
 0x296   :  { %v213_v39 = vpop.permute.xlu0 %212 }
 0x297   :  { %v216_v40 = vsel %vm215_vm3, %v213_v39, 0.0 }
 0x298   :  { %217 = vadd.xlane.f32.xlu1 %v216_v40 }
 0x2b1   :  { %224 = vrot.lane.b32.xlu1 %v201_v33, %s314_s10 }
 0x30b   :  { %v218_v41 = vpop.xlane.xlu1 %217 }
 0x30c   :  { %v219_v42 = vmul.f32 2.0, %v218_v41 }
 0x30e   :  { %v220_v43 = vsub.f32 -0.9031654, %v219_v42 }
 0x310   :  { %222 = vst.msk [vmem:[%s422_s7] sm:$0xff] %vm221_vm4, %v220_v43 }
 0x323   :  { %v225_v44 = vpop.permute.xlu1 %224 }
 0x324   :  { %228 = vst.msk [vmem:[%s422_s7] sm:$0xff] %vm227_vm5, %v225_v44 }

</bundles_post_ra>
